<compile_context>
chip_gen: v6e
topology: v6e:2x2x1
jax: 0.10.0
libtpu: 0.0.40
codegen_flags: <defaults>
</compile_context>

<pallas_src>
import functools

import jax
import jax.numpy as jnp
from jax.experimental import pallas as pl
from jax.experimental.pallas import tpu as pltpu


# ---------------------------------------------------------------------------
# Kernel: one grid step handles APT attributes (= TN = APT*C columns of w1).
# ---------------------------------------------------------------------------
def classifier_kernel(pooled_ref, w1_ref, shift_ref, w2_ref, b2_ref,
                      xsep_ref, logits_ref):
    # pooled_ref: (N, C)        bf16   (resident across all tiles)
    # w1_ref:     (C, TN)       bf16   (BN-folded Linear weight columns for this tile)
    # shift_ref:  (1, TN)       f32    (folded bias + BN shift)
    # w2_ref:     (1, APT, C)   f32    (per-attribute head weights for this tile)
    # b2_ref:     (1, 1, APT)   f32
    # xsep_ref:   (N, TN)       f32    (pre-ReLU activations, returned as `x`)
    # logits_ref: (1, N, APT)   f32
    y = jnp.dot(pooled_ref[...], w1_ref[...],
                preferred_element_type=jnp.float32)          # MXU, f32 accumulation
    y = y + shift_ref[...]                                    # folded bias + eval-BN affine
    xsep_ref[...] = y.astype(xsep_ref.dtype)

    r = jnp.maximum(y, 0.0)                                   # ReLU
    w2 = w2_ref[0].astype(jnp.float32)                        # (APT, C)
    b2 = b2_ref[0]                                            # (1, APT)
    apt, c = w2.shape
    # Per-attribute heads: multiply + lane reduce (VPU/XLU) instead of a mostly-zero
    # block-diagonal matmul. Static, lane-aligned slices -> no relayout cost.
    cols = [
        jnp.sum(r[:, a * c:(a + 1) * c] * w2[a:a + 1, :], axis=-1, keepdims=True)
        for a in range(apt)
    ]
    logits = jnp.concatenate(cols, axis=-1) + b2              # (N, APT)
    logits_ref[0] = logits.astype(logits_ref.dtype)


# ---------------------------------------------------------------------------
# Wrapper
# ---------------------------------------------------------------------------
@functools.partial(jax.jit, static_argnums=(2, 3, 4))
def classifier_forward(x_nchw, kparams, nattr, c_in, apt):
    """x_nchw: (N, C, H, W). Returns (logits (N, nattr), x_sep (N, nattr, C))."""
    w1f, shift, w2r, b2r = kparams
    N = x_nchw.shape[0]
    num_tiles = w2r.shape[0]
    nattr_pad = num_tiles * apt
    tn = apt * c_in
    assert tn % 128 == 0, "attrs-per-tile * channels must be a multiple of 128 lanes"

    # Global average pool directly on NCHW in plain JAX (no transpose, 49x smaller kernel input).
    pooled = jnp.mean(x_nchw, axis=(2, 3)).astype(jnp.bfloat16)      # (N, C)

    # Explicit VMEM budget: double-buffered tiles + resident pooled activations + headroom.
    needed = 2 * (c_in * tn * 2          # w1 tile (bf16)
                  + tn * 4               # shift tile
                  + apt * c_in * 4       # w2 tile
                  + apt * 4              # b2 tile
                  + N * c_in * 2         # pooled
                  + N * tn * 4           # xsep tile
                  + N * apt * 4)         # logits tile
    vmem_limit = int(min(max(needed + (2 << 20), 16 * 1024 * 1024), 48 * 1024 * 1024))

    xsep_flat, logits_t = pl.pallas_call(
        classifier_kernel,
        out_shape=(
            jax.ShapeDtypeStruct((N, nattr_pad * c_in), jnp.float32),
            jax.ShapeDtypeStruct((num_tiles, N, apt), jnp.float32),
        ),
        grid=(num_tiles,),
        in_specs=[
            pl.BlockSpec((N, c_in), lambda j: (0, 0)),          # pooled (resident)
            pl.BlockSpec((c_in, tn), lambda j: (0, j)),         # w1 columns (streamed)
            pl.BlockSpec((1, tn), lambda j: (0, j)),            # folded shift
            pl.BlockSpec((1, apt, c_in), lambda j: (j, 0, 0)),  # head weights
            pl.BlockSpec((1, 1, apt), lambda j: (j, 0, 0)),     # head biases
        ],
        out_specs=(
            pl.BlockSpec((N, tn), lambda j: (0, j)),            # xsep columns
            pl.BlockSpec((1, N, apt), lambda j: (j, 0, 0)),     # logits per tile
        ),
        compiler_params=pltpu.CompilerParams(
            dimension_semantics=("parallel",),
            vmem_limit_bytes=vmem_limit,
        ),
    )(pooled, w1f, shift, w2r, b2r)

    x_sep = xsep_flat[:, :nattr * c_in].reshape(N, nattr, c_in)
    logits = logits_t.transpose(1, 0, 2).reshape(N, nattr_pad)[:, :nattr]
    return logits, x_sep


# ---------------------------------------------------------------------------
# Parameter construction
# ---------------------------------------------------------------------------
def init_raw_params(key, nattr, c_in):
    """Raw f32 parameters mirroring the PyTorch module."""
    ks = jax.random.split(key, 8)
    w1 = jax.random.normal(ks[0], (c_in, nattr * c_in), jnp.float32) / jnp.sqrt(c_in)
    b1 = 0.01 * jax.random.normal(ks[1], (1, nattr * c_in), jnp.float32)
    gamma = 1.0 + 0.1 * jax.random.normal(ks[2], (nattr * c_in,), jnp.float32)
    beta = 0.1 * jax.random.normal(ks[3], (nattr * c_in,), jnp.float32)
    run_mean = 0.1 * jax.random.normal(ks[4], (nattr * c_in,), jnp.float32)
    run_var = jnp.abs(1.0 + 0.1 * jax.random.normal(ks[5], (nattr * c_in,), jnp.float32))
    eps = 1e-5
    w2 = jax.random.normal(ks[6], (nattr, c_in), jnp.float32) / jnp.sqrt(c_in)
    b2 = 0.01 * jax.random.normal(ks[7], (1, nattr), jnp.float32)
    return (w1, b1, gamma, beta, run_mean, run_var, eps, w2, b2)


def prepare_kernel_params(raw, nattr, c_in, apt):
    """Fold eval-BN + bias into w1/shift, pad attrs to a multiple of APT, bf16 weights."""
    w1, b1, gamma, beta, run_mean, run_var, eps, w2, b2 = raw
    inv_std = gamma / jnp.sqrt(run_var + eps)                       # (nattr*c_in,)
    w1f = w1 * inv_std[None, :]                                     # fold BN scale
    shift = b1 * inv_std[None, :] + (beta - run_mean * inv_std)[None, :]

    nattr_pad = ((nattr + apt - 1) // apt) * apt
    num_tiles = nattr_pad // apt
    pad_attr = nattr_pad - nattr
    if pad_attr:
        w1f = jnp.pad(w1f, ((0, 0), (0, pad_attr * c_in)))
        shift = jnp.pad(shift, ((0, 0), (0, pad_attr * c_in)))
        w2 = jnp.pad(w2, ((0, pad_attr), (0, 0)))
        b2 = jnp.pad(b2, ((0, 0), (0, pad_attr)))

    w1f = w1f.astype(jnp.bfloat16)                                  # halve weight bandwidth
    shift = shift.astype(jnp.float32)
    w2r = w2.reshape(num_tiles, apt, c_in).astype(jnp.float32)
    b2r = b2.reshape(num_tiles, 1, apt).astype(jnp.float32)
    return (w1f, shift, w2r, b2r)


def reference_forward(x_nchw, raw, nattr, c_in):
    """Plain-JAX f32 reference mirroring the PyTorch forward (eval-mode BN)."""
    w1, b1, gamma, beta, run_mean, run_var, eps, w2, b2 = raw
    N = x_nchw.shape[0]
    x = jnp.transpose(x_nchw, (0, 2, 3, 1)).reshape(N, -1, c_in)    # n (h w) c
    x = jnp.mean(x, axis=1)                                         # n c
    x = x @ w1 + b1
    x = (x - run_mean) / jnp.sqrt(run_var + eps) * gamma + beta
    x_sep = x.reshape(N, nattr, c_in)
    logits = jnp.concatenate(
        [jnp.maximum(x_sep[:, i, :], 0.0) @ w2[i][:, None] + b2[0, i]
         for i in range(nattr)], axis=1)
    return logits, x_sep


if __name__ == "__main__":
    # Small but lane-/sublane-aligned demo shapes (N=8 rows, C=128 lanes, 7x7 spatial).
    N, C, H, W = 8, 128, 7, 7
    NATTR = 5
    APT = 2          # attributes per grid tile -> TN = APT*C = 256 columns/step, grid=(3,)

    key = jax.random.PRNGKey(0)
    kx, kp = jax.random.split(key)
    x = jax.random.normal(kx, (N, C, H, W), jnp.float32)

    raw_params = init_raw_params(kp, NATTR, C)
    kernel_params = prepare_kernel_params(raw_params, NATTR, C, APT)

    logits, x_sep = classifier_forward(x, kernel_params, NATTR, C, APT)
    jax.block_until_ready((logits, x_sep))

    ref_logits, ref_xsep = reference_forward(x, raw_params, NATTR, C)
    assert logits.shape == (N, NATTR) and x_sep.shape == (N, NATTR, C)
    assert jnp.allclose(x_sep, ref_xsep, atol=1e-2, rtol=1e-2), "x_sep mismatch"
    assert jnp.allclose(logits, ref_logits, atol=1e-2, rtol=1e-2), "logits mismatch"

    print("KERNEL_OK")
</pallas_src>

<mosaic_0001>
module attributes {stable_mosaic.version = 11 : i64} {
  func.func @classifier_kernel(%arg0: i32, %arg1: memref<8x128xbf16, #tpu.memory_space<vmem>>, %arg2: memref<128x256xbf16, #tpu.memory_space<vmem>>, %arg3: memref<1x256xf32, #tpu.memory_space<vmem>>, %arg4: memref<1x2x128xf32, #tpu.memory_space<vmem>>, %arg5: memref<1x1x2xf32, #tpu.memory_space<vmem>>, %arg6: memref<8x256xf32, #tpu.memory_space<vmem>>, %arg7: memref<1x8x2xf32, #tpu.memory_space<vmem>>) attributes {dimension_semantics = [#tpu.dimension_semantics<parallel>], iteration_bounds = array<i64: 3>, scalar_prefetch = 0 : i64, scratch_operands = 0 : i64, tpu.core_type = #tpu.core_type<tc>, window_params = [{pipeline_mode = #tpu.pipeline_mode<synchronous>, transform_indices = @transform_0, window_bounds = array<i64: 8, 128>}, {transform_indices = @transform_1, window_bounds = array<i64: 128, 256>}, {transform_indices = @transform_2, window_bounds = array<i64: 1, 256>}, {transform_indices = @transform_3, window_bounds = array<i64: 1, 2, 128>}, {transform_indices = @transform_4, window_bounds = array<i64: 1, 1, 2>}, {transform_indices = @transform_5, window_bounds = array<i64: 8, 256>}, {transform_indices = @transform_6, window_bounds = array<i64: 1, 8, 2>}]} {
    %c0 = arith.constant 0 : index
    %c0_0 = arith.constant 0 : index
    %0 = vector.load %arg1[%c0, %c0_0] : memref<8x128xbf16, #tpu.memory_space<vmem>>, vector<8x128xbf16>
    %c0_1 = arith.constant 0 : index
    %c0_2 = arith.constant 0 : index
    %1 = vector.load %arg2[%c0_1, %c0_2] : memref<128x256xbf16, #tpu.memory_space<vmem>>, vector<128x256xbf16>
    %cst = arith.constant dense<0.000000e+00> : vector<8x256xf32>
    %2 = tpu.matmul %0, %1, %cst {dimension_numbers = #tpu.dot_dimension_numbers<[1], [0], [0], [1], [0, 0, 1, 1], [], []>} : vector<8x128xbf16>, vector<128x256xbf16>, vector<8x256xf32> -> vector<8x256xf32>
    %c0_3 = arith.constant 0 : index
    %c0_4 = arith.constant 0 : index
    %3 = vector.load %arg3[%c0_3, %c0_4] : memref<1x256xf32, #tpu.memory_space<vmem>>, vector<1x256xf32>
    %4 = vector.broadcast %3 : vector<1x256xf32> to vector<8x256xf32>
    %5 = arith.addf %2, %4 : vector<8x256xf32>
    %c0_5 = arith.constant 0 : index
    %c0_6 = arith.constant 0 : index
    %6 = vector.load %arg6[%c0_5, %c0_6] : memref<8x256xf32, #tpu.memory_space<vmem>>, vector<8x256xf32>
    tpu.vector_store %arg6[%c0_5, %c0_6], %5 {strides = array<i32>} : memref<8x256xf32, #tpu.memory_space<vmem>>, vector<8x256xf32>,
    %cst_7 = arith.constant 0.000000e+00 : f32
    %7 = vector.broadcast %cst_7 : f32 to vector<8x256xf32>
    %8 = arith.maximumf %5, %7 : vector<8x256xf32>
    %c0_8 = arith.constant 0 : index
    %c0_9 = arith.constant 0 : index
    %c0_10 = arith.constant 0 : index
    %9 = vector.load %arg4[%c0_8, %c0_9, %c0_10] : memref<1x2x128xf32, #tpu.memory_space<vmem>>, vector<1x2x128xf32>
    %10 = vector.shape_cast %9 : vector<1x2x128xf32> to vector<2x128xf32>
    %c0_11 = arith.constant 0 : index
    %c0_12 = arith.constant 0 : index
    %c0_13 = arith.constant 0 : index
    %11 = vector.load %arg5[%c0_11, %c0_12, %c0_13] : memref<1x1x2xf32, #tpu.memory_space<vmem>>, vector<1x1x2xf32>
    %12 = vector.shape_cast %11 : vector<1x1x2xf32> to vector<1x2xf32>
    %13 = vector.extract_strided_slice %8 {offsets = [0, 0], sizes = [8, 128], strides = [1, 1]} : vector<8x256xf32> to vector<8x128xf32>
    %14 = vector.extract_strided_slice %10 {offsets = [0, 0], sizes = [1, 128], strides = [1, 1]} : vector<2x128xf32> to vector<1x128xf32>
    %15 = vector.broadcast %14 : vector<1x128xf32> to vector<8x128xf32>
    %16 = arith.mulf %13, %15 : vector<8x128xf32>
    %cst_14 = arith.constant dense<0.000000e+00> : vector<8xf32>
    %17 = vector.multi_reduction <add>, %16, %cst_14 [1] : vector<8x128xf32> to vector<8xf32>
    %18 = vector.shape_cast %17 : vector<8xf32> to vector<8x1xf32>
    %19 = vector.extract_strided_slice %8 {offsets = [0, 128], sizes = [8, 128], strides = [1, 1]} : vector<8x256xf32> to vector<8x128xf32>
    %20 = vector.extract_strided_slice %10 {offsets = [1, 0], sizes = [1, 128], strides = [1, 1]} : vector<2x128xf32> to vector<1x128xf32>
    %21 = vector.broadcast %20 : vector<1x128xf32> to vector<8x128xf32>
    %22 = arith.mulf %19, %21 : vector<8x128xf32>
    %cst_15 = arith.constant dense<0.000000e+00> : vector<8xf32>
    %23 = vector.multi_reduction <add>, %22, %cst_15 [1] : vector<8x128xf32> to vector<8xf32>
    %24 = vector.shape_cast %23 : vector<8xf32> to vector<8x1xf32>
    %25 = tpu.concatenate %18, %24 in 1 : vector<8x1xf32>, vector<8x1xf32> -> vector<8x2xf32>
    %26 = vector.broadcast %12 : vector<1x2xf32> to vector<8x2xf32>
    %27 = arith.addf %25, %26 : vector<8x2xf32>
    %c0_16 = arith.constant 0 : index
    %c0_17 = arith.constant 0 : index
    %c0_18 = arith.constant 0 : index
    %28 = vector.load %arg7[%c0_16, %c0_17, %c0_18] : memref<1x8x2xf32, #tpu.memory_space<vmem>>, vector<1x8x2xf32>
    %29 = vector.shape_cast %28 : vector<1x8x2xf32> to vector<8x2xf32>
    %30 = vector.shape_cast %27 : vector<8x2xf32> to vector<1x8x2xf32>
    tpu.vector_store %arg7[%c0_16, %c0_17, %c0_18], %30 {strides = array<i32>} : memref<1x8x2xf32, #tpu.memory_space<vmem>>, vector<1x8x2xf32>,
    return
  }
  func.func @transform_0(%arg0: i32) -> (i32, i32) {
    %c0_i32 = arith.constant 0 : i32
    %c0_i32_0 = arith.constant 0 : i32
    %c0_i32_1 = arith.constant 0 : i32
    return %c0_i32, %c0_i32_0 : i32, i32
  }
  func.func @transform_1(%arg0: i32) -> (i32, i32) {
    %c0_i32 = arith.constant 0 : i32
    %c0_i32_0 = arith.constant 0 : i32
    return %c0_i32, %arg0 : i32, i32
  }
  func.func @transform_2(%arg0: i32) -> (i32, i32) {
    %c0_i32 = arith.constant 0 : i32
    %c0_i32_0 = arith.constant 0 : i32
    return %c0_i32, %arg0 : i32, i32
  }
  func.func @transform_3(%arg0: i32) -> (i32, i32, i32) {
    %c0_i32 = arith.constant 0 : i32
    %c0_i32_0 = arith.constant 0 : i32
    %c0_i32_1 = arith.constant 0 : i32
    return %arg0, %c0_i32, %c0_i32_0 : i32, i32, i32
  }
  func.func @transform_4(%arg0: i32) -> (i32, i32, i32) {
    %c0_i32 = arith.constant 0 : i32
    %c0_i32_0 = arith.constant 0 : i32
    %c0_i32_1 = arith.constant 0 : i32
    return %arg0, %c0_i32, %c0_i32_0 : i32, i32, i32
  }
  func.func @transform_5(%arg0: i32) -> (i32, i32) {
    %c0_i32 = arith.constant 0 : i32
    %c0_i32_0 = arith.constant 0 : i32
    return %c0_i32, %arg0 : i32, i32
  }
  func.func @transform_6(%arg0: i32) -> (i32, i32, i32) {
    %c0_i32 = arith.constant 0 : i32
    %c0_i32_0 = arith.constant 0 : i32
    %c0_i32_1 = arith.constant 0 : i32
    return %arg0, %c0_i32, %c0_i32_0 : i32, i32, i32
  }
}

</mosaic_0001>

<bundles_post_ra>
// kernel: classifier_forward.1
= control target key start
LH: loop header
LB: loop body
LE: loop exit
PB: predicated region body
PF: predicated region fallthrough
CT: control target
= control target key end

     0   :  { %s859_s21 = smov 0   ;;  %s861_s22 = smov 0   ;;  %s952_s0 = inlined_call_operand.vmem [shape: bf16[8,128], index: 0, kind: input, shape index: {}]   ;;  %s953_s1 = inlined_call_operand.vmem [shape: bf16[128,768], index: 1, kind: input, shape index: {}]   ;;  %s954_s2 = inlined_call_operand.vmem [shape: f32[1,768], index: 2, kind: input, shape index: {}]   ;;  %s955_s3 = inlined_call_operand.vmem [shape: f32[3,2,128], index: 3, kind: input, shape index: {}]   ;;  %s956_s4 = inlined_call_operand.vmem [shape: f32[3,1,2], index: 4, kind: input, shape index: {}]   ;;  %s957_s5 = inlined_call_operand.vmem [shape: f32[8,768], index: 5, kind: output, shape index: {0}]   ;;  %s958_s6 = inlined_call_operand.vmem [shape: f32[3,8,2], index: 6, kind: output, shape index: {1}]  }
   0x1   :  { %s863_s23 = smov 0  }
   0x2 LB: > { %s875_s24 = sadd.s32 4294967295, %s821_s23   ;;  %s878_s25 = sadd.s32 1, %s821_s23   ;;  %s821_s23 = sphi %s863_s23, %s961_s23   ;;  %s817_s22 = sphi %s861_s22, %s960_s22   ;;  %s813_s21 = sphi %s859_s21, %s959_s21  }
   0x3   : > { %s42_s26 = ssub.s32 %s821_s23, %s878_s25  ;;  %s45_s27 = sadd.s32 1, %s817_s22 }
   0x4   : > { %p43_p0 = scmp.eq.s32.totalorder %s42_s26, 0  ;;  %p52_p1 = scmp.ne.s32.totalorder %s817_s22, %s813_s21 }
   0x5   : > { %p53_p2 = scmp.eq.s32.totalorder %s821_s23, 0  ;;  %p719_p4 = scmp.ge.s32.totalorder %s821_s23, 3 }
   0x6   : > { %s887_s28 = scalar_select %p43_p0, %s817_s22, %s45_s27  }
   0x7   : > { %p54_p3 = por %p53_p2, %p52_p1  ;;  %211 = sbr.rel (%p719_p4) target bundleno = 24 (0x18), region = 20 }
   0xc   : > { %214 = sbr.rel (!%p54_p3) target bundleno = 24 (0x18), region = 24  ;;  %s216_s29 = sand.u32 (%p54_p3), 1, %s817_s22  }
   0xd   : > { %s749_s30 = sshll.u32 (%p54_p3), %s821_s23, 3  ;;  %s720_s7 = sshll.u32 (%p54_p3), %s216_s29, 7 }
   0xe   : > { %s895_s10 = scalar_lea.vmem (%p54_p3), %s953_s1, %s749_s30  ;;  %s218_s11 = scalar_lea.vmem (%p54_p3), [#allocation2], %s720_s7 }
   0xf   : > { %v280_v0 = vld [vmem:[%s895_s10] sm:$0xff] (%p54_p3)  ;;  %v282_v1 = vld [vmem:[%s895_s10 + $0x18] sm:$0xff] (%p54_p3)  ;;  %v284_v2 = vld [vmem:[%s895_s10 + $0x30] sm:$0xff] (%p54_p3) }
  0x10   : > { %281 = vst [vmem:[%s218_s11] sm:$0xff] (%p54_p3), %v280_v0  ;;  %283 = vst [vmem:[%s218_s11 + $0x8] sm:$0xff] (%p54_p3), %v282_v1  ;;  %v286_v3 = vld [vmem:[%s895_s10 + $0x48] sm:$0xff] (%p54_p3)  ;;  %v288_v4 = vld [vmem:[%s895_s10 + $0x60] sm:$0xff] (%p54_p3) }
  0x11   : > { %285 = vst [vmem:[%s218_s11 + $0x10] sm:$0xff] %v284_v2  ;;  %v290_v5 = vld [vmem:[%s895_s10 + $0x78] sm:$0xff]  ;;  %287 = vst [vmem:[%s218_s11 + $0x18] sm:$0xff] %v286_v3  ;;  %v292_v6 = vld [vmem:[%s895_s10 + $0x90] sm:$0xff] }
  0x12   : > { %289 = vst [vmem:[%s218_s11 + $0x20] sm:$0xff] %v288_v4  ;;  %291 = vst [vmem:[%s218_s11 + $0x28] sm:$0xff] %v290_v5  ;;  %v294_v7 = vld [vmem:[%s895_s10 + $0xa8] sm:$0xff]  ;;  %v296_v8 = vld [vmem:[%s895_s10 + $0xc0] sm:$0xff] }
  0x13   : > { %293 = vst [vmem:[%s218_s11 + $0x30] sm:$0xff] %v292_v6  ;;  %295 = vst [vmem:[%s218_s11 + $0x38] sm:$0xff] %v294_v7  ;;  %v298_v9 = vld [vmem:[%s895_s10 + $0xd8] sm:$0xff]  ;;  %v300_v10 = vld [vmem:[%s895_s10 + $0xf0] sm:$0xff] }
  0x14   : > { %297 = vst [vmem:[%s218_s11 + $0x40] sm:$0xff] %v296_v8  ;;  %v302_v11 = vld [vmem:[%s895_s10 + $0x108] sm:$0xff]  ;;  %299 = vst [vmem:[%s218_s11 + $0x48] sm:$0xff] %v298_v9  ;;  %v304_v12 = vld [vmem:[%s895_s10 + $0x120] sm:$0xff] }
  0x15   : > { %301 = vst [vmem:[%s218_s11 + $0x50] sm:$0xff] %v300_v10  ;;  %303 = vst [vmem:[%s218_s11 + $0x58] sm:$0xff] %v302_v11  ;;  %v306_v13 = vld [vmem:[%s895_s10 + $0x138] sm:$0xff]  ;;  %v308_v14 = vld [vmem:[%s895_s10 + $0x150] sm:$0xff] }
  0x16   : > { %305 = vst [vmem:[%s218_s11 + $0x60] sm:$0xff] %v304_v12  ;;  %307 = vst [vmem:[%s218_s11 + $0x68] sm:$0xff] %v306_v13  ;;  %v310_v15 = vld [vmem:[%s895_s10 + $0x168] sm:$0xff] }
  0x17   : > { %309 = vst [vmem:[%s218_s11 + $0x70] sm:$0xff] %v308_v14  ;;  %311 = vst [vmem:[%s218_s11 + $0x78] sm:$0xff] %v310_v15 }
  0x18 PF: > { %p723_p5 = scmp.ge.s32.totalorder %s821_s23, 1  ;;  %p337_p6 = scmp.lt.s32.totalorder %s821_s23, 4 }
  0x1a   : > { %p338_p7 = pnand %p723_p5, %p337_p6 }
  0x1b   : > { %s344_s12 = sand.u32 (!%p338_p7), 1, %s813_s21   ;;  %s725_s17 = sshll.u32 (!%p338_p7), %s875_s24, 1 }
  0x1c   : > { %341 = sbr.rel (%p338_p7) target bundleno = 411 (0x19b), region = 74  ;;  %s724_s13 = sshll.u32 (!%p338_p7), %s344_s12, 7 }
  0x1d   : > { %s346_s14 = scalar_lea.vmem (!%p338_p7), [#allocation2], %s724_s13  ;;  %p390_p8 = scmp.lt.s32.totalorder (!%p338_p7), %s725_s17, 5 }
  0x1e   : > { %p394_p9 = scmp.lt.s32.totalorder (!%p338_p7), %s875_s24, 2 }
  0x21   : > { %v823_v16 = vmov 0   ;;  %v775_v17 = vld [vmem:[%s346_s14 + $0x74] ss:$8 sps:$4 sm:$0xff]   ;;  %v777_v18 = vld [vmem:[%s346_s14 + $0x70] ss:$8 sps:$4 sm:$0xff]   ;;  %v431_v34 = vlaneseq  ;;  %s963_s17 = smov (!%p390_p8, %s725_s17), 5 }
  0x22   : > { %553 = vmatprep.mubr.bf16.mxu0 %v823_v16  ;;  %521 = vmatprep.subr.bf16.mxu0 %v775_v17  ;;  %v778_v19 = vld [vmem:[%s346_s14 + $0x64] ss:$8 sps:$4 sm:$0xff]   ;;  %v780_v20 = vld [vmem:[%s346_s14 + $0x60] ss:$8 sps:$4 sm:$0xff]   ;;  %v781_v21 = vld [vmem:[%s346_s14 + $0x54] ss:$8 sps:$4 sm:$0xff]   ;;  %s392_s20 = scalar_lea.vmem %s954_s2, %s963_s17 }
  0x23   : > { %522 = vmatpush1.bf16.msra.mxu0 %v777_v18  ;;  %v783_v22 = vld [vmem:[%s346_s14 + $0x50] ss:$8 sps:$4 sm:$0xff]   ;;  %v784_v23 = vld [vmem:[%s346_s14 + $0x44] ss:$8 sps:$4 sm:$0xff]   ;;  %v786_v24 = vld [vmem:[%s346_s14 + $0x40] ss:$8 sps:$4 sm:$0xff]  }
  0x24   : > { %523 = vmatprep.subr.bf16.mxu0 %v778_v19  ;;  %v787_v25 = vld [vmem:[%s346_s14 + $0x34] ss:$8 sps:$4 sm:$0xff]   ;;  %v789_v26 = vld [vmem:[%s346_s14 + $0x30] ss:$8 sps:$4 sm:$0xff]   ;;  %v790_v27 = vld [vmem:[%s346_s14 + $0x24] ss:$8 sps:$4 sm:$0xff]  }
  0x25   : > { %v792_v28 = vld [vmem:[%s346_s14 + $0x20] ss:$8 sps:$4 sm:$0xff]   ;;  %v793_v29 = vld [vmem:[%s346_s14 + $0x14] ss:$8 sps:$4 sm:$0xff]   ;;  %v795_v30 = vld [vmem:[%s346_s14 + $0x10] ss:$8 sps:$4 sm:$0xff]  }
  0x26   : > { %v796_v31 = vld [vmem:[%s346_s14 + $0x4] ss:$8 sps:$4 sm:$0xff]   ;;  %v798_v32 = vld [vmem:[%s346_s14] ss:$8 sps:$4 sm:$0xff]   ;;  %s965_s24 = smov (!%p394_p9, %s875_s24), 2  ;;  %v432_v35 = vshrl.u32 %v431_v34, 7 }
  0x27   : > { %524 = vmatpush1.bf16.msra.mxu0 %v780_v20  ;;  %v412_v33 = vld [vmem:[%s952_s0] sm:$0xf]  ;;  %s726_s21 = sshll.u32 %s965_s24, 1  ;;  %s728_s29 = sshll.u32 %s963_s17, 3  ;;  %vm582_vm0 = vcmask 7168   ;;  %vm591_vm1 = vcmask 15360  }
  0x28   : > { %525 = vmatprep.subr.bf16.mxu0 %v781_v21  ;;  %v433_v36 = vsub.s32 0, %v432_v35  ;;  %v429_v37 = vld [vmem:[%s392_s20] sm:$0x3]  ;;  %v437_v38 = vsub.s32 1, %v432_v35  ;;  %s397_s27 = scalar_lea.vmem %s955_s3, %s726_s21  ;;  %s405_s8 = scalar_lea.vmem %s957_s5, %s728_s29 }
  0x29   : > { %v566_v40 = vld [vmem:[%s397_s27] sm:$0x3]  ;;  %s400_s11 = scalar_lea.vmem %s956_s4, %s965_s24  ;;  %s729_s12 = sshll.u32 %s965_s24, 3 }
  0x2a   : > { %v434_v39 = vrot.slane %v429_v37, %v433_v36  ;;  %v438_v41 = vrot.slane %v429_v37, %v437_v38  ;;  %v571_v44 = vrot.slane %v566_v40, %v433_v36  ;;  %v578_v51 = vrot.slane %v566_v40, %v437_v38  ;;  %v746_v55 = vld [vmem:[%s400_s11] ss:$0 sm:$0xff]  ;;  %s410_s15 = scalar_lea.vmem %s958_s6, %s729_s12 }
  0x2b   : > { %526 = vmatpush1.bf16.msra.mxu0 %v783_v22 }
  0x2c   : > { %527 = vmatprep.subr.bf16.mxu0 %v784_v23 }
  0x2f   : > { %528 = vmatpush1.bf16.msra.mxu0 %v786_v24 }
  0x30   : > { %529 = vmatprep.subr.bf16.mxu0 %v787_v25 }
  0x33   : > { %530 = vmatpush1.bf16.msra.mxu0 %v789_v26 }
  0x34   : > { %531 = vmatprep.subr.bf16.mxu0 %v790_v27 }
  0x37   : > { %532 = vmatpush1.bf16.msra.mxu0 %v792_v28 }
  0x38   : > { %533 = vmatprep.subr.bf16.mxu0 %v793_v29 }
  0x3b   : > { %534 = vmatpush1.bf16.msra.mxu0 %v795_v30 }
  0x3c   : > { %535 = vmatprep.subr.bf16.mxu0 %v796_v31 }
  0x3f   : > { %536 = vmatpush1.bf16.msra.mxu0 %v798_v32 }
  0x42   : > { %554 = vmatmul.mubr.bf16.vlgmr.msra.gmra.mxu0 %v412_v33 }
 0x102   : > { %v555_v42 = vpop.f32.mrf.mxu0 }
 0x103   : > { %v556_v43 = vadd.f32 %v555_v42, %v434_v39 }
 0x104   : > { %v557_v45 = vpop.f32.mrf.mxu0 }
 0x105   : > { %562 = vst [vmem:[%s405_s8] sm:$0xff] %v556_v43  ;;  %v558_v46 = vadd.f32 %v557_v45, %v438_v41  ;;  %v564_v47 = vmax.f32 %v556_v43, 0.0 }
 0x106   : > { %v559_v48 = vpop.f32.mrf.mxu0 }
 0x107   : > { %563 = vst [vmem:[%s405_s8 + $0x8] sm:$0xff] %v558_v46  ;;  %v565_v49 = vmax.f32 %v558_v46, 0.0  ;;  %v572_v50 = vmul.f32 %v571_v44, %v564_v47 }
 0x108   : > { %v560_v52 = vpop.f32.mrf.mxu0 }
 0x109   : > { %573 = vadd.xlane.f32.xlu0 %v572_v50  ;;  %v579_v53 = vmul.f32 %v578_v51, %v565_v49 }
 0x10d   : > { %580 = vadd.xlane.f32.xlu0 %v579_v53 }
 0x192   : > { %v574_v54 = vpop.xlane.xlu0 %573 }
 0x196   : > { %v581_v56 = vpop.xlane.xlu0 %580 }
 0x197   : > { %v583_v57 = vsel %vm582_vm0, %v574_v54, %v581_v56 }
 0x198   : > { %v590_v58 = vadd.f32 %v746_v55, %v583_v57 }
 0x19a   : > { %592 = vst.msk [vmem:[%s410_s15] sm:$0xff] %vm591_vm1, %v590_v58 }
 0x19b PF: > { %p14_p10 = scmp.ge.s32.totalorder %s878_s25, 5   ;;  %s959_s21 = smov %s817_s22 }
 0x19c   : > { %s960_s22 = smov %s887_s28  ;;  %s961_s23 = smov %s878_s25 }
 0x19d   :  { %16 = sbr.rel (!%p14_p10) target bundleno = 2 (0x2), region = 134 }

</bundles_post_ra>
